<compile_context>
chip_gen: v6e
topology: v6e:2x2x1
jax: 0.10.0
libtpu: 0.0.40
codegen_flags: <defaults>
</compile_context>

<pallas_src>
from math import sqrt

import jax
import jax.numpy as jnp
from jax import lax
from jax.experimental import pallas as pl
from jax.experimental.pallas import tpu as pltpu


def _matcher_kernel(k_ref, v_ref, qin_ref, out_ref):
    """Grid-step body.

    k_ref   : (bb, d_key, obj_n*bank_n)       fused keys (lane-dense, 48 wide)
    v_ref   : (bb, obj_n*d_val, obj_n*bank_n) block-diagonal values
    qin_ref : (bb, d_key, N)
    out_ref : (bb, obj_n*d_val, N)            dense, lane-aligned `mem` output
    bb is 1 (per-batch step, multi-TC chips) or B (single collapsed step, v5e/v6e).
    """
    bb, d_key, _ = k_ref.shape
    scale = 1.0 / sqrt(d_key)

    for b in range(bb):                                   # bb in {1, B}: static unroll
        # Fold 1/sqrt(d_key) into q once (single VALU pass over (d_key, N)).
        q = qin_ref[b] * scale                            # (d_key, N)

        # p_all = K_all^T Q : one MXU push for all objects; contract d_key directly
        # (no explicit transpose / XLU work).
        p = lax.dot_general(
            k_ref[b], q,
            dimension_numbers=(((0,), (0,)), ((), ())),
            preferred_element_type=jnp.float32)           # (obj_n*bank_n, N)

        # Row-wise softmax over the query axis; rows from different objects are
        # independent so one fused pass == per-object softmax.  Exact reciprocal
        # on the tiny (obj_n*bank_n, 1) denominator keeps strict reference parity.
        p_max = jnp.max(p, axis=-1, keepdims=True)
        e = jnp.exp(p - p_max)
        denom = jnp.sum(e, axis=-1, keepdims=True)
        p = e * (1.0 / denom)

        # mem_all = blockdiag(V_0..V_{obj_n-1}) @ p_all : one MXU push; rows are already
        # ordered (obj, d_val) so the store is a single dense, lane-aligned block.
        mem = jnp.dot(v_ref[b], p.astype(v_ref.dtype),
                      preferred_element_type=jnp.float32)  # (obj_n*d_val, N)

        out_ref[b] = mem.astype(out_ref.dtype)


def _single_tensorcore_chip() -> bool:
    """True for single-TensorCore chips (v5e/v6e) -> collapse the grid to one step."""
    try:
        kind = jax.devices()[0].device_kind.lower()
    except Exception:
        return False
    return any(t in kind for t in ("v5 lite", "v5e", "v5lite", "v6 lite", "v6e", "v6lite"))


def matcher_forward(keys, values, q_in, q_out, *, update_bank=False, input_dtype=None):
    """Pallas Matcher (bank read-out) forward.

    keys   : (obj_n, B, d_key, bank_n)
    values : (obj_n, B, d_val, bank_n)
    q_in   : (B, d_key, N)
    q_out  : (B, d_val, N)
    returns: (B, d_val, obj_n, 2N)   (PyTorch output layout, assembled in the wrapper)
    """
    if update_bank:
        raise NotImplementedError(
            "update_bank=True mutates FeatureBank state across calls; not supported here.")

    obj_n, B, d_key, bank_n = keys.shape
    d_val = values.shape[2]
    N = q_in.shape[-1]
    assert q_out.shape == (B, d_val, N), "cat(dim=1) requires d_val == q_out channels"

    OB = obj_n * bank_n
    OD = obj_n * d_val

    # ---- wrapper-side preprocessing (tiny; fused by XLA) ------------------------------
    # Fused keys: lane dim 48 instead of 16 -> far less (8,128)/vreg padding, 1 MXU push.
    k_all = jnp.transpose(keys, (1, 2, 0, 3)).reshape(B, d_key, OB)
    # Block-diagonal values: block (i, i) = V_i, shape (B, obj_n*d_val, obj_n*bank_n).
    eye = jnp.eye(obj_n, dtype=values.dtype)
    v_b = jnp.transpose(values, (1, 0, 2, 3))                       # (B, obj_n, d_val, bank_n)
    v_blk = (v_b[:, :, :, None, :] * eye[None, :, None, :, None]).reshape(B, OD, OB)

    if input_dtype is not None:
        # Optional bf16 path: halves input DMA bytes, native MXU dtype on v6e/v7x.
        # Accumulation stays f32 (preferred_element_type); softmax stays f32.
        k_all = k_all.astype(input_dtype)
        v_blk = v_blk.astype(input_dtype)
        q_in = q_in.astype(input_dtype)

    out_dtype = q_out.dtype

    # ---- generation-aware grid ---------------------------------------------------------
    # v5e/v6e: one TensorCore -> a second grid step is pure fixed overhead; unroll B.
    # v7x / megacore: grid=(B,) "parallel" shards the batch steps across TensorCores.
    if B == 1 or _single_tensorcore_chip():
        grid, bb = (1,), B
        idx3 = lambda i: (0, 0, 0)
    else:
        grid, bb = (B,), 1
        idx3 = lambda i: (i, 0, 0)

    itemsize_in = k_all.dtype.itemsize
    cost = pl.CostEstimate(
        flops=2 * B * OB * N * (d_key + OD),
        transcendentals=B * OB * N,
        bytes_accessed=(k_all.size + v_blk.size + q_in.size) * itemsize_in
        + B * OD * N * q_out.dtype.itemsize,
    )

    # Working set per step is <0.5 MB double-buffered — ~100x below even v7x's 64 MiB
    # VMEM — so every array uses its full slice as a single block (no tiling needed).
    mem = pl.pallas_call(
        _matcher_kernel,
        out_shape=jax.ShapeDtypeStruct((B, OD, N), out_dtype),
        grid_spec=pltpu.PrefetchScalarGridSpec(
            num_scalar_prefetch=0,
            grid=grid,
            in_specs=[
                pl.BlockSpec((bb, d_key, OB), idx3),
                pl.BlockSpec((bb, OD, OB), idx3),
                pl.BlockSpec((bb, d_key, N), idx3),
            ],
            out_specs=pl.BlockSpec((bb, OD, N), idx3),
        ),
        compiler_params=pltpu.CompilerParams(
            dimension_semantics=("parallel",)),
        cost_estimate=cost,
    )(k_all, v_blk, q_in)

    # ---- wrapper-side epilogue: layout + replicated q_out half (never stored in-kernel)
    mem = mem.reshape(B, obj_n, d_val, N)
    mem = jnp.transpose(mem, (0, 2, 1, 3))                           # (B, d_val, obj_n, N)
    q_rep = jnp.broadcast_to(q_out[:, :, None, :], (B, d_val, obj_n, N))
    return jnp.concatenate([mem, q_rep.astype(out_dtype)], axis=-1)  # (B, d_val, obj_n, 2N)


def matcher_reference(keys, values, q_in, q_out):
    """Pure-JAX reference mirroring the PyTorch loop."""
    obj_n, B, d_key, bank_n = keys.shape
    out = []
    for j in range(B):
        per_obj = []
        for i in range(obj_n):
            p = (keys[i, j].T @ q_in[j]) / sqrt(d_key)
            p = jax.nn.softmax(p, axis=1)
            mem = values[i, j] @ p
            per_obj.append(jnp.concatenate([mem, q_out[j]], axis=1))
        t = jnp.stack(per_obj, axis=0)          # (obj_n, d_val, 2N)
        out.append(jnp.transpose(t, (1, 0, 2))) # (d_val, obj_n, 2N)
    return jnp.stack(out, axis=0)               # (B, d_val, obj_n, 2N)


if __name__ == "__main__":
    # Small shapes consistent with the module:
    #   B=2, obj_n=3, d_key=32, d_val=32, bank_n=16, N = K*H*W = 3*8*8 = 192
    B, obj_n, d_key, d_val, bank_n = 2, 3, 32, 32, 16
    K, H, W = obj_n, 8, 8
    N = K * H * W

    key = jax.random.PRNGKey(0)
    k_keys, k_vals, k_qin, k_qout = jax.random.split(key, 4)
    keys = jax.random.normal(k_keys, (obj_n, B, d_key, bank_n), dtype=jnp.float32)
    values = jax.random.normal(k_vals, (obj_n, B, d_val, bank_n), dtype=jnp.float32)
    q_in = jax.random.normal(k_qin, (B, d_key, N), dtype=jnp.float32)
    q_out = jax.random.normal(k_qout, (B, d_val, N), dtype=jnp.float32)

    ref = matcher_reference(keys, values, q_in, q_out)

    # f32 path (default): strict parity with the reference.
    out = jax.block_until_ready(matcher_forward(keys, values, q_in, q_out))
    assert out.shape == (B, d_val, obj_n, 2 * N), out.shape
    assert jnp.allclose(out, ref, atol=1e-4, rtol=1e-4), float(jnp.max(jnp.abs(out - ref)))

    # Optional bf16-input path (halved input DMA, native MXU dtype); looser tolerance.
    out_bf16 = jax.block_until_ready(
        matcher_forward(keys, values, q_in, q_out, input_dtype=jnp.bfloat16))
    assert jnp.allclose(out_bf16, ref, atol=6e-2, rtol=6e-2)

    print("KERNEL_OK")
</pallas_src>

<mosaic_0001>
module attributes {stable_mosaic.version = 11 : i64} {
  func.func @_matcher_kernel(%arg0: i32, %arg1: memref<1x32x48xf32, #tpu.memory_space<vmem>>, %arg2: memref<1x96x48xf32, #tpu.memory_space<vmem>>, %arg3: memref<1x32x192xf32, #tpu.memory_space<vmem>>, %arg4: memref<1x96x192xf32, #tpu.memory_space<vmem>>) attributes {dimension_semantics = [#tpu.dimension_semantics<parallel>], iteration_bounds = array<i64: 2>, scalar_prefetch = 0 : i64, scratch_operands = 0 : i64, tpu.core_type = #tpu.core_type<tc>, window_params = [{transform_indices = @transform_0, window_bounds = array<i64: 1, 32, 48>}, {transform_indices = @transform_1, window_bounds = array<i64: 1, 96, 48>}, {transform_indices = @transform_2, window_bounds = array<i64: 1, 32, 192>}, {transform_indices = @transform_3, window_bounds = array<i64: 1, 96, 192>}]} {
    %c0 = arith.constant 0 : index
    %c0_0 = arith.constant 0 : index
    %c0_1 = arith.constant 0 : index
    %0 = vector.load %arg3[%c0, %c0_0, %c0_1] : memref<1x32x192xf32, #tpu.memory_space<vmem>>, vector<1x32x192xf32>
    %1 = vector.shape_cast %0 : vector<1x32x192xf32> to vector<32x192xf32>
    %cst = arith.constant 0.176776692 : f32
    %2 = vector.broadcast %cst : f32 to vector<32x192xf32>
    %3 = arith.mulf %1, %2 : vector<32x192xf32>
    %c0_2 = arith.constant 0 : index
    %c0_3 = arith.constant 0 : index
    %c0_4 = arith.constant 0 : index
    %4 = vector.load %arg1[%c0_2, %c0_3, %c0_4] : memref<1x32x48xf32, #tpu.memory_space<vmem>>, vector<1x32x48xf32>
    %5 = vector.shape_cast %4 : vector<1x32x48xf32> to vector<32x48xf32>
    %cst_5 = arith.constant dense<0.000000e+00> : vector<48x192xf32>
    %6 = tpu.matmul %5, %3, %cst_5 {dimension_numbers = #tpu.dot_dimension_numbers<[0], [0], [1], [1], [0, 1, 1, 1], [], []>} : vector<32x48xf32>, vector<32x192xf32>, vector<48x192xf32> -> vector<48x192xf32>
    %cst_6 = arith.constant dense<0xFF800000> : vector<48xf32>
    %7 = vector.multi_reduction <maximumf>, %6, %cst_6 [1] : vector<48x192xf32> to vector<48xf32>
    %8 = vector.shape_cast %7 : vector<48xf32> to vector<48x1xf32>
    %9 = vector.broadcast %8 : vector<48x1xf32> to vector<48x192xf32>
    %10 = arith.subf %6, %9 : vector<48x192xf32>
    %11 = math.exp %10 : vector<48x192xf32>
    %cst_7 = arith.constant dense<0.000000e+00> : vector<48xf32>
    %12 = vector.multi_reduction <add>, %11, %cst_7 [1] : vector<48x192xf32> to vector<48xf32>
    %13 = vector.shape_cast %12 : vector<48xf32> to vector<48x1xf32>
    %cst_8 = arith.constant 1.000000e+00 : f32
    %14 = vector.broadcast %cst_8 : f32 to vector<48x1xf32>
    %15 = arith.divf %14, %13 : vector<48x1xf32>
    %16 = vector.broadcast %15 : vector<48x1xf32> to vector<48x192xf32>
    %17 = arith.mulf %11, %16 : vector<48x192xf32>
    %c0_9 = arith.constant 0 : index
    %c0_10 = arith.constant 0 : index
    %c0_11 = arith.constant 0 : index
    %18 = vector.load %arg2[%c0_9, %c0_10, %c0_11] : memref<1x96x48xf32, #tpu.memory_space<vmem>>, vector<1x96x48xf32>
    %19 = vector.shape_cast %18 : vector<1x96x48xf32> to vector<96x48xf32>
    %cst_12 = arith.constant dense<0.000000e+00> : vector<96x192xf32>
    %20 = tpu.matmul %19, %17, %cst_12 {dimension_numbers = #tpu.dot_dimension_numbers<[1], [0], [0], [1], [0, 0, 1, 1], [], []>} : vector<96x48xf32>, vector<48x192xf32>, vector<96x192xf32> -> vector<96x192xf32>
    %c0_13 = arith.constant 0 : index
    %c0_14 = arith.constant 0 : index
    %c0_15 = arith.constant 0 : index
    %21 = vector.load %arg4[%c0_13, %c0_14, %c0_15] : memref<1x96x192xf32, #tpu.memory_space<vmem>>, vector<1x96x192xf32>
    %22 = vector.shape_cast %21 : vector<1x96x192xf32> to vector<96x192xf32>
    %23 = vector.shape_cast %20 : vector<96x192xf32> to vector<1x96x192xf32>
    tpu.vector_store %arg4[%c0_13, %c0_14, %c0_15], %23 {strides = array<i32>} : memref<1x96x192xf32, #tpu.memory_space<vmem>>, vector<1x96x192xf32>,
    return
  }
  func.func @transform_0(%arg0: i32) -> (i32, i32, i32) {
    %c0_i32 = arith.constant 0 : i32
    %c0_i32_0 = arith.constant 0 : i32
    %c0_i32_1 = arith.constant 0 : i32
    return %arg0, %c0_i32, %c0_i32_0 : i32, i32, i32
  }
  func.func @transform_1(%arg0: i32) -> (i32, i32, i32) {
    %c0_i32 = arith.constant 0 : i32
    %c0_i32_0 = arith.constant 0 : i32
    %c0_i32_1 = arith.constant 0 : i32
    return %arg0, %c0_i32, %c0_i32_0 : i32, i32, i32
  }
  func.func @transform_2(%arg0: i32) -> (i32, i32, i32) {
    %c0_i32 = arith.constant 0 : i32
    %c0_i32_0 = arith.constant 0 : i32
    %c0_i32_1 = arith.constant 0 : i32
    return %arg0, %c0_i32, %c0_i32_0 : i32, i32, i32
  }
  func.func @transform_3(%arg0: i32) -> (i32, i32, i32) {
    %c0_i32 = arith.constant 0 : i32
    %c0_i32_0 = arith.constant 0 : i32
    %c0_i32_1 = arith.constant 0 : i32
    return %arg0, %c0_i32, %c0_i32_0 : i32, i32, i32
  }
}

</mosaic_0001>

<bundles_post_ra>
// kernel: tpu_custom_call.1
= control target key start
LH: loop header
LB: loop body
LE: loop exit
PB: predicated region body
PF: predicated region fallthrough
CT: control target
= control target key end

     0   :  { %8 = vsyncpa [#allocation3], 0  ;;  %s1251_s0 = inlined_call_operand.vmem [shape: f32[2,32,48], index: 0, kind: input, shape index: {}]   ;;  %s1252_s1 = inlined_call_operand.vmem [shape: f32[2,96,48], index: 1, kind: input, shape index: {}]   ;;  %s1253_s2 = inlined_call_operand.vmem [shape: f32[2,32,192], index: 2, kind: input, shape index: {}]   ;;  %s1254_s3 = inlined_call_operand.hbm [shape: f32[2,96,192], index: 3, kind: output, shape index: {}]  }
   0x1   :  { %10 = vsyncpa [#allocation3 + $0x1], 0  ;;  %s1011_s12 = smov 0   ;;  %s1013_s13 = smov 0  }
   0x2   :  { %s1015_s14 = smov 0   ;;  %s1017_s15 = smov 0  }
   0x3 LB: > { %s1032_s16 = sadd.s32 4294967295, %s985_s15   ;;  %s800_s17 = sadd.s32 4294967294, %s985_s15   ;;  %s985_s15 = sphi %s1017_s15, %s1260_s15   ;;  %s981_s14 = sphi %s1015_s14, %s1259_s14   ;;  %s977_s13 = sphi %s1013_s13, %s1258_s13   ;;  %s973_s12 = sphi %s1011_s12, %s1257_s12  }
   0x4   : > { %s1036_s18 = sadd.s32 1, %s985_s15   ;;  %s101_s19 = sadd.s32 1, %s981_s14 }
   0x5   : > { %s98_s20 = ssub.s32 %s985_s15, %s1036_s18  ;;  %p111_p0 = scmp.ne.s32.totalorder %s981_s14, %s977_s13 }
   0x6   : > { %p99_p1 = scmp.eq.s32.totalorder %s98_s20, 0  ;;  %p112_p2 = scmp.eq.s32.totalorder %s1032_s16, 1 }
   0x7   : > { %p117_p3 = scmp.ne.s32.totalorder %s977_s13, %s973_s12  ;;  %p118_p4 = scmp.eq.s32.totalorder %s800_s17, 1 }
   0x8   : > { %s1047_s21 = scalar_select %p99_p1, %s981_s14, %s101_s19  }
   0x9   : > { %p1049_p5 = por %p112_p2, %p111_p0  ;;  %p1053_p6 = por %p118_p4, %p117_p3 }
   0xa   : > { %p803_p7 = scmp.ge.s32.totalorder %s985_s15, 1  ;;  %p160_p8 = scmp.lt.s32.totalorder %s985_s15, 3 }
   0xc   : > { %p161_p9 = pnand %p803_p7, %p160_p8 }
   0xd   : > { %p194_p10 = scmp.lt.s32.totalorder (!%p161_p9), %s1032_s16, 1  ;;  %s191_s10 = sand.u32 (!%p161_p9), 1, %s977_s13  }
   0xe   : > { %164 = sbr.rel (%p161_p9) target bundleno = 948 (0x3b4), region = 32 }
   0xf   : > { %s844_s11 = smul.u32 (!%p161_p9), 192, %s191_s10 }
  0x10   : > { %s846_s19 = smul.u32 (!%p161_p9), 3072, %s1032_s16 }
  0x11   : > { %s1162_s17 = scalar_lea.vmem (!%p161_p9), [#allocation2], %s844_s11 }
  0x12   : > { %s714_s20 = sshll.u32 (!%p161_p9), %s1162_s17, 4  ;;  %s1202_s26 = scalar_lea.hbm (!%p161_p9), %s1254_s3, %s846_s19  ;;  %s1204_s20 = int_to_ptr.vmem [resolvable:$true] %s714_s20 }
  0x13   : > { %v987_v0 = vmov 0.0   ;;  %s1063_s24 = scalar_select %p194_p10, %s1032_s16, 1  ;;  %vm261_vm0 = vcmask 261120   ;;  %vm381_vm1 = vcmask 523264   ;;  %vm502_vm2 = vcmask 392192  }
  0x14   : > { %344 = vmatprep.mubr.f32.mxu0 %v987_v0  ;;  %621 = vmatprep.mubr.f32.mxu1 %v987_v0  ;;  %s1211_s16 = scalar_lea.sflag [#allocation3], %s191_s10  ;;  %s925_s27 = scalar_lea.vmem %s1204_s20, 3072 }
  0x15   : > { %s830_s25 = sshll.u32 %s1063_s24, 5  ;;  %s831_s29 = sshll.u32 %s1063_s24, 6 }
  0x16   : > { %s1069_s28 = scalar_lea.vmem %s1251_s0, %s830_s25  ;;  %s208_s5 = scalar_lea.vmem %s1253_s2, %s831_s29 }
  0x17   : > { %v225_v1 = vld [vmem:[%s1069_s28] sm:$0xff]  ;;  %v226_v2 = vld [vmem:[%s1069_s28 + $0x8] sm:$0xff]  ;;  %v216_v3 = vld [vmem:[%s208_s5 + $0x38] sm:$0xff]  ;;  %s845_s6 = smul.u32 96, %s1063_s24  ;;  %p926_p11 = scmp.ne.s32.totalorder %s1204_s20, %s925_s27 }
  0x18   : > { %229 = vxpose.xlu0.b32.start [1/4] (short) (narrow) %v225_v1, 48  ;;  %v215_v4 = vld [vmem:[%s208_s5 + $0x30] sm:$0xff]  ;;  %v224_v5 = vmul.f32 0.17677669, %v216_v3  ;;  %v214_v7 = vld [vmem:[%s208_s5 + $0x28] sm:$0xff]  ;;  %v213_v8 = vld [vmem:[%s208_s5 + $0x20] sm:$0xff] }
  0x19   : > { %v223_v6 = vmul.f32 0.17677669, %v215_v4  ;;  %v222_v9 = vmul.f32 0.17677669, %v214_v7  ;;  %v221_v10 = vmul.f32 0.17677669, %v213_v8  ;;  %s1123_s9 = scalar_lea.vmem %s1252_s1, %s845_s6  ;;  %p927_p12 = pnand %p926_p11, %p1049_p5 }
  0x1a   : > { %v212_v11 = vld [vmem:[%s208_s5 + $0x18] sm:$0xff]  ;;  %v211_v12 = vld [vmem:[%s208_s5 + $0x10] sm:$0xff]  ;;  %304 = vmatprep.subr.mxu0 %v224_v5  ;;  %v210_v14 = vld [vmem:[%s208_s5 + $0x8] sm:$0xff] }
  0x1b   : > { %v220_v13 = vmul.f32 0.17677669, %v212_v11  ;;  %v209_v15 = vld [vmem:[%s208_s5] sm:$0xff]  ;;  %305 = vmatpush1.msra.mxu0 %v223_v6  ;;  %v219_v16 = vmul.f32 0.17677669, %v211_v12  ;;  %v227_v17 = vld [vmem:[%s1069_s28 + $0x10] sm:$0xff]  ;;  %p928_p13 = pneg %p927_p12 }
  0x1c   : > { %230 = vxpose.xlu0.b32.cont [2/4] (short) (narrow) %v226_v2, 48  ;;  %306 = vmatprep.subr.mxu0 %v222_v9  ;;  %v218_v18 = vmul.f32 0.17677669, %v210_v14  ;;  %v217_v19 = vmul.f32 0.17677669, %v209_v15  ;;  %v228_v20 = vld [vmem:[%s1069_s28 + $0x18] sm:$0xff] }
  0x1d   : > { %307 = vmatpush1.msra.mxu0 %v221_v10  ;;  %s988_s28 = smov [#allocation2]  }
  0x1e   : > { %308 = vmatprep.subr.mxu0 %v220_v13  ;;  %s929_s29 = sshll.u32 %s988_s28, 4  ;;  %s930_s29 = int_to_ptr.vmem [resolvable:$false] %s929_s29 }
  0x1f   : > { %309 = vmatpush1.msra.mxu0 %v219_v16  ;;  %s931_s30 = scalar_lea.vmem %s930_s29, 6144  ;;  %p932_p0 = scmp.lt.s32.totalorder %s1204_s20, %s930_s29 }
  0x20   : > { %231 = vxpose.xlu0.b32.cont [3/4] (short) (narrow) %v227_v17, 48  ;;  %310 = vmatprep.subr.mxu0 %v218_v18  ;;  %p933_p1 = scmp.lt.s32.totalorder %s931_s30, %s925_s27 }
  0x21   : > { %311 = vmatpush1.msra.mxu0 %v217_v19 }
  0x22   : > { %p934_p2 = por %p933_p1, %p932_p0 }
  0x24   : > { %232 = vxpose.xlu0.b32.end [4/4] (short) (narrow) %v228_v20, 48  ;;  %p935_p3 = pnand %p934_p2, %p928_p13 }
  0x94   : > { %v245_v21 = vpop.trf.xlu0 }
  0x95   : > { %809 = vmatmul.mubr.msk.f32.vlgmr.msra.gmra.mxu0 %vm261_vm0, %v245_v21 }
  0x96   : > { %350 = vmatprep.mubr.f32.mxu0 %v987_v0 }
  0x98   : > { %v246_v22 = vpop.trf.xlu0 }
  0x99   : > { %810 = vmatmul.mubr.msk.f32.gmra.mxu0 %vm261_vm0, %v246_v22 }
  0x9a   : > { %356 = vmatprep.mubr.f32.mxu0 %v987_v0 }
  0x9c   : > { %v247_v23 = vpop.trf.xlu0 }
  0x9d   : > { %811 = vmatmul.mubr.msk.f32.gmra.mxu0 %vm261_vm0, %v247_v23 }
  0x9e   : > { %362 = vmatprep.mubr.f32.mxu0 %v987_v0 }
  0xa0   : > { %v248_v24 = vpop.trf.xlu0 }
  0xa1   : > { %812 = vmatmul.mubr.msk.f32.gmra.mxu0 %vm261_vm0, %v248_v24 }
  0xa2   : > { %368 = vmatprep.mubr.f32.mxu0 %v987_v0 }
  0xa4   : > { %v249_v25 = vpop.trf.xlu0 }
  0xa5   : > { %813 = vmatmul.mubr.msk.f32.gmra.mxu0 %vm261_vm0, %v249_v25 }
  0xa6   : > { %374 = vmatprep.mubr.f32.mxu0 %v987_v0 }
  0xa8   : > { %v250_v26 = vpop.trf.xlu0 }
  0xa9   : > { %814 = vmatmul.mubr.msk.f32.gmra.mxu0 %vm261_vm0, %v250_v26 }
  0xaa   : > { %603 = vmatprep.mubr.f32.mxu0 %v987_v0 }
 0x155   : > { %v1091_v27 = vpop.f32.mrf.mxu0 }
 0x157   : > { %v1093_v28 = vpop.f32.mrf.mxu0 }
 0x158   : > { %v382_v49 = vsel %vm381_vm1, %v1093_v28, -inf }
 0x159   : > { %v1095_v29 = vpop.f32.mrf.mxu0  ;;  %v383_v50 = vmax.f32 %v1091_v27, %v382_v49 }
 0x15b   : > { %v354_v30 = vpop.f32.mrf.mxu0 }
 0x15c   : > { %v386_v31 = vsel %vm381_vm1, %v354_v30, -inf }
 0x15d   : > { %v358_v32 = vpop.f32.mrf.mxu0  ;;  %v387_v33 = vmax.f32 %v1095_v29, %v386_v31 }
 0x15f   : > { %388 = vmax.xlane.f32.xlu0 %v387_v33  ;;  %v360_v34 = vpop.f32.mrf.mxu0 }
 0x160   : > { %v390_v47 = vsel %vm381_vm1, %v360_v34, -inf }
 0x161   : > { %v364_v35 = vpop.f32.mrf.mxu0  ;;  %v391_v48 = vmax.f32 %v358_v32, %v390_v47 }
 0x163   : > { %v366_v36 = vpop.f32.mrf.mxu0 }
 0x164   : > { %v394_v45 = vsel %vm381_vm1, %v366_v36, -inf }
 0x165   : > { %v370_v37 = vpop.f32.mrf.mxu0  ;;  %v395_v46 = vmax.f32 %v364_v35, %v394_v45 }
 0x167   : > { %v372_v38 = vpop.f32.mrf.mxu0 }
 0x168   : > { %v398_v39 = vsel %vm381_vm1, %v372_v38, -inf }
 0x169   : > { %v376_v40 = vpop.f32.mrf.mxu0  ;;  %v399_v41 = vmax.f32 %v370_v37, %v398_v39 }
 0x16b   : > { %400 = vmax.xlane.f32.xlu1 %v399_v41  ;;  %v378_v42 = vpop.f32.mrf.mxu0 }
 0x16c   : > { %v402_v43 = vsel %vm381_vm1, %v378_v42, -inf }
 0x16d   : > { %v403_v44 = vmax.f32 %v376_v40, %v402_v43 }
 0x16f   : > { %404 = vmax.xlane.f32.xlu1 %v403_v44 }
 0x173   : > { %396 = vmax.xlane.f32.xlu1 %v395_v46 }
 0x177   : > { %392 = vmax.xlane.f32.xlu1 %v391_v48 }
 0x17b   : > { %384 = vmax.xlane.f32.xlu1 %v383_v50 }
 0x1e8   : > { %v389_v4 = vpop.xlane.xlu0 %388 }
 0x1e9   : > { %v409_v7 = vsub.f32 %v354_v30, %v389_v4  ;;  %v408_v10 = vsub.f32 %v1095_v29, %v389_v4  ;;  %v490_v4 = vld [vmem:[%s1123_s9] sm:$0xff] }
 0x1eb   : > { %v424_v12 = vmul.f32 1.442695, %v409_v7  ;;  %v422_v15 = vmul.f32 1.442695, %v408_v10  ;;  %v495_v7 = vld [vmem:[%s1123_s9 + $0x28] sm:$0xff]  ;;  %v497_v10 = vld [vmem:[%s1123_s9 + $0x38] sm:$0xff] }
 0x1f4   : > { %v401_v51 = vpop.xlane.xlu1 %400 }
 0x1f5   : > { %v415_v52 = vsub.f32 %v372_v38, %v401_v51  ;;  %v414_v56 = vsub.f32 %v370_v37, %v401_v51 }
 0x1f7   : > { %v436_v54 = vmul.f32 1.442695, %v415_v52  ;;  %v434_v63 = vmul.f32 1.442695, %v414_v56 }
 0x1f8   : > { %v405_v53 = vpop.xlane.xlu1 %404 }
 0x1f9   : > { %v417_v59 = vsub.f32 %v378_v42, %v405_v53  ;;  %889 = vpow2.f32 %v436_v54  ;;  %v416_v1 = vsub.f32 %v376_v40, %v405_v53 }
 0x1fb   : > { %v440_v2 = vmul.f32 1.442695, %v417_v59  ;;  %v438_v5 = vmul.f32 1.442695, %v416_v1 }
 0x1fc   : > { %v397_v55 = vpop.xlane.xlu1 %396 }
 0x1fd   : > { %v412_v57 = vsub.f32 %v364_v35, %v397_v55  ;;  %v413_v58 = vsub.f32 %v366_v36, %v397_v55 }
 0x1ff   : > { %v430_v60 = vmul.f32 1.442695, %v412_v57  ;;  %v432_v61 = vmul.f32 1.442695, %v413_v58 }
 0x200   : > { %v393_v62 = vpop.xlane.xlu1 %392 }
 0x201   : > { %891 = vpow2.f32 %v430_v60  ;;  %v411_v3 = vsub.f32 %v360_v34, %v393_v62  ;;  %v410_v6 = vsub.f32 %v358_v32, %v393_v62 }
 0x202   : > { %893 = vpow2.f32 %v432_v61 }
 0x203   : > { %895 = vpow2.f32 %v434_v63  ;;  %v428_v8 = vmul.f32 1.442695, %v411_v3  ;;  %v426_v11 = vmul.f32 1.442695, %v410_v6  ;;  %v493_v3 = vld [vmem:[%s1123_s9 + $0x18] sm:$0xff]  ;;  %v491_v6 = vld [vmem:[%s1123_s9 + $0x8] sm:$0xff] }
 0x204   : > { %897 = vpow2.f32 %v440_v2  ;;  %v385_v9 = vpop.xlane.xlu1 %384 }
 0x205   : > { %899 = vpow2.f32 %v438_v5  ;;  %v407_v13 = vsub.f32 %v1093_v28, %v385_v9  ;;  %v406_v16 = vsub.f32 %v1091_v27, %v385_v9  ;;  %v494_v5 = vld [vmem:[%s1123_s9 + $0x20] sm:$0xff]  ;;  %v496_v9 = vld [vmem:[%s1123_s9 + $0x30] sm:$0xff] }
 0x206   : > { %901 = vpow2.f32 %v428_v8  ;;  %v890_v14 = vpop.eup %889  ;;  %v492_v8 = vld [vmem:[%s1123_s9 + $0x10] sm:$0xff] }
 0x207   : > { %903 = vpow2.f32 %v426_v11  ;;  %v420_v18 = vmul.f32 1.442695, %v407_v13  ;;  %v418_v21 = vmul.f32 1.442695, %v406_v16  ;;  %v458_v24 = vsel %vm381_vm1, %v890_v14, 0.0  ;;  %v498_v11 = vld [vmem:[%s1123_s9 + $0x40] sm:$0xff] }
 0x208   : > { %905 = vpow2.f32 %v424_v12  ;;  %v499_v12 = vld [vmem:[%s1123_s9 + $0x48] sm:$0xff]  ;;  %v500_v13 = vld [vmem:[%s1123_s9 + $0x50] sm:$0xff] }
 0x209   : > { %907 = vpow2.f32 %v422_v15 }
 0x20a   : > { %909 = vpow2.f32 %v420_v18 }
 0x20b   : > { %911 = vpow2.f32 %v418_v21 }
 0x20e   : > { %v1109_v17 = vpop.eup %891 }
 0x20f   : > { %v894_v19 = vpop.eup %893 }
 0x210   : > { %v454_v20 = vsel %vm381_vm1, %v894_v19, 0.0  ;;  %v896_v23 = vpop.eup %895 }
 0x211   : > { %v455_v22 = vadd.f32 %v1109_v17, %v454_v20  ;;  %v898_v25 = vpop.eup %897  ;;  %v459_v26 = vadd.f32 %v896_v23, %v458_v24 }
 0x212   : > { %v900_v27 = vpop.eup %899  ;;  %v462_v28 = vsel %vm381_vm1, %v898_v25, 0.0 }
 0x213   : > { %456 = vadd.xlane.f32.xlu1 %v455_v22  ;;  %v902_v29 = vpop.eup %901  ;;  %v463_v30 = vadd.f32 %v900_v27, %v462_v28 }
 0x214   : > { %v904_v31 = vpop.eup %903  ;;  %v450_v32 = vsel %vm381_vm1, %v902_v29, 0.0 }
 0x215   : > { %v906_v33 = vpop.eup %905  ;;  %v451_v34 = vadd.f32 %v904_v31, %v450_v32 }
 0x216   : > { %v908_v35 = vpop.eup %907  ;;  %v446_v36 = vsel %vm381_vm1, %v906_v33, 0.0 }
 0x217   : > { %460 = vadd.xlane.f32.xlu1 %v459_v26  ;;  %v910_v37 = vpop.eup %909  ;;  %v447_v38 = vadd.f32 %v908_v35, %v446_v36 }
 0x218   : > { %v912_v39 = vpop.eup %911  ;;  %v442_v40 = vsel %vm381_vm1, %v910_v37, 0.0 }
 0x219   : > { %v443_v41 = vadd.f32 %v912_v39, %v442_v40 }
 0x21b   : > { %464 = vadd.xlane.f32.xlu1 %v463_v30 }
 0x21f   : > { %452 = vadd.xlane.f32.xlu1 %v451_v34 }
 0x223   : > { %448 = vadd.xlane.f32.xlu1 %v447_v38 }
 0x227   : > { %444 = vadd.xlane.f32.xlu1 %v443_v41 }
 0x29c   : > { %v457_v42 = vpop.xlane.xlu1 %456 }
 0x2a0   : > { %v461_v43 = vpop.xlane.xlu1 %460 }
 0x2a1   : > { %913 = vrcp.f32 %v461_v43 }
 0x2a4   : > { %v465_v44 = vpop.xlane.xlu1 %464 }
 0x2a5   : > { %915 = vrcp.f32 %v465_v44 }
 0x2a6   : > { %917 = vrcp.f32 %v457_v42 }
 0x2a8   : > { %v453_v45 = vpop.xlane.xlu1 %452 }
 0x2a9   : > { %919 = vrcp.f32 %v453_v45 }
 0x2ac   : > { %v449_v46 = vpop.xlane.xlu1 %448 }
 0x2ad   : > { %921 = vrcp.f32 %v449_v46 }
 0x2ae   : > { %v914_v48 = vpop.eup %913 }
 0x2af   : > { %v487_v53 = vmul.f32 %v914_v48, %v890_v14  ;;  %v486_v55 = vmul.f32 %v914_v48, %v896_v23  ;;  %v501_v14 = vld [vmem:[%s1123_s9 + $0x58] sm:$0xff] }
 0x2b0   : > { %v445_v47 = vpop.xlane.xlu1 %444 }
 0x2b1   : > { %923 = vrcp.f32 %v445_v47 }
 0x2b2   : > { %v916_v49 = vpop.eup %915 }
 0x2b3   : > { %v489_v50 = vmul.f32 %v916_v49, %v898_v25  ;;  %v488_v51 = vmul.f32 %v916_v49, %v900_v27  ;;  %v918_v52 = vpop.eup %917 }
 0x2b4   : > { %v485_v56 = vmul.f32 %v918_v52, %v894_v19  ;;  %v484_v57 = vmul.f32 %v918_v52, %v1109_v17 }
 0x2b5   : > { %559 = vmatprep.subr.mxu0 %v489_v50  ;;  %832 = vmatprep.subr.mxu1 %v489_v50 }
 0x2b6   : > { %v920_v54 = vpop.eup %919  ;;  %560 = vmatpush1.msra.mxu0 %v488_v51  ;;  %838 = vmatpush1.msra.mxu1 %v488_v51 }
 0x2b7   : > { %561 = vmatprep.subr.mxu0 %v487_v53  ;;  %833 = vmatprep.subr.mxu1 %v487_v53  ;;  %v483_v58 = vmul.f32 %v920_v54, %v902_v29  ;;  %v482_v60 = vmul.f32 %v920_v54, %v904_v31 }
 0x2b8   : > { %562 = vmatpush1.msra.mxu0 %v486_v55  ;;  %839 = vmatpush1.msra.mxu1 %v486_v55 }
 0x2b9   : > { %563 = vmatprep.subr.mxu0 %v485_v56  ;;  %834 = vmatprep.subr.mxu1 %v485_v56 }
 0x2ba   : > { %v922_v59 = vpop.eup %921  ;;  %564 = vmatpush1.msra.mxu0 %v484_v57  ;;  %840 = vmatpush1.msra.mxu1 %v484_v57 }
 0x2bb   : > { %565 = vmatprep.subr.mxu0 %v483_v58  ;;  %835 = vmatprep.subr.mxu1 %v483_v58  ;;  %v481_v61 = vmul.f32 %v922_v59, %v906_v33  ;;  %v480_v62 = vmul.f32 %v922_v59, %v908_v35 }
 0x2bc   : > { %566 = vmatpush1.msra.mxu0 %v482_v60  ;;  %841 = vmatpush1.msra.mxu1 %v482_v60 }
 0x2bd   : > { %567 = vmatprep.subr.mxu0 %v481_v61  ;;  %836 = vmatprep.subr.mxu1 %v481_v61 }
 0x2be   : > { %v924_v63 = vpop.eup %923  ;;  %568 = vmatpush1.msra.mxu0 %v480_v62  ;;  %842 = vmatpush1.msra.mxu1 %v480_v62 }
 0x2bf   : > { %v479_v1 = vmul.f32 %v924_v63, %v910_v37  ;;  %v478_v2 = vmul.f32 %v924_v63, %v912_v39 }
 0x2c1   : > { %569 = vmatprep.subr.mxu0 %v479_v1  ;;  %837 = vmatprep.subr.mxu1 %v479_v1 }
 0x2c2   : > { %570 = vmatpush1.msra.mxu0 %v478_v2  ;;  %843 = vmatpush1.msra.mxu1 %v478_v2 }
 0x2c3   : > { %818 = vmatmul.mubr.msk.f32.vlgmr.msra.gmra.mxu1 %vm502_vm2, %v493_v3  ;;  %815 = vmatmul.mubr.msk.f32.vlgmr.msra.gmra.mxu0 %vm502_vm2, %v490_v4 }
 0x2c4   : > { %627 = vmatprep.mubr.f32.mxu1 %v987_v0  ;;  %609 = vmatprep.mubr.f32.mxu0 %v987_v0 }
 0x2c7   : > { %819 = vmatmul.mubr.msk.f32.gmra.mxu1 %vm502_vm2, %v494_v5  ;;  %816 = vmatmul.mubr.msk.f32.gmra.mxu0 %vm502_vm2, %v491_v6 }
 0x2c8   : > { %633 = vmatprep.mubr.f32.mxu1 %v987_v0  ;;  %615 = vmatprep.mubr.f32.mxu0 %v987_v0 }
 0x2cb   : > { %820 = vmatmul.mubr.msk.f32.gmra.mxu1 %vm502_vm2, %v495_v7  ;;  %817 = vmatmul.mubr.msk.f32.gmra.mxu0 %vm502_vm2, %v492_v8 }
 0x2cc   : > { %639 = vmatprep.mubr.f32.mxu1 %v987_v0 }
 0x2cf   : > { %821 = vmatmul.mubr.msk.f32.gmra.mxu1 %vm502_vm2, %v496_v9 }
 0x2d0   : > { %645 = vmatprep.mubr.f32.mxu1 %v987_v0 }
 0x2d3   : > { %822 = vmatmul.mubr.msk.f32.gmra.mxu1 %vm502_vm2, %v497_v10 }
 0x2d4   : > { %651 = vmatprep.mubr.f32.mxu1 %v987_v0 }
 0x2d7   : > { %823 = vmatmul.mubr.msk.f32.gmra.mxu1 %vm502_vm2, %v498_v11 }
 0x2d8   : > { %657 = vmatprep.mubr.f32.mxu1 %v987_v0 }
 0x2db   : > { %824 = vmatmul.mubr.msk.f32.gmra.mxu1 %vm502_vm2, %v499_v12 }
 0x2dc   : > { %663 = vmatprep.mubr.f32.mxu1 %v987_v0 }
 0x2df   : > { %825 = vmatmul.mubr.msk.f32.gmra.mxu1 %vm502_vm2, %v500_v13 }
 0x2e0   : > { %669 = vmatprep.mubr.f32.mxu1 %v987_v0 }
 0x2e3   : > { %826 = vmatmul.mubr.msk.f32.gmra.mxu1 %vm502_vm2, %v501_v14 }
 0x383   : > { %v623_v15 = vpop.f32.mrf.mxu1  ;;  %v605_v16 = vpop.f32.mrf.mxu0 }
 0x384   : > { %682 = vst [vmem:[%s1162_s17 + $0x30] sm:$0xff] %v623_v15  ;;  %676 = vst [vmem:[%s1162_s17] sm:$0xff] %v605_v16 }
 0x385   : > { %v625_v0 = vpop.f32.mrf.mxu1  ;;  %v607_v17 = vpop.f32.mrf.mxu0 }
 0x386   : > { %683 = vst.msk [vmem:[%s1162_s17 + $0x38] sm:$0xff] %vm381_vm1, %v625_v0  ;;  %677 = vst.msk [vmem:[%s1162_s17 + $0x8] sm:$0xff] %vm381_vm1, %v607_v17 }
 0x387   : > { %v629_v18 = vpop.f32.mrf.mxu1  ;;  %v611_v19 = vpop.f32.mrf.mxu0 }
 0x388   : > { %684 = vst [vmem:[%s1162_s17 + $0x40] sm:$0xff] %v629_v18  ;;  %678 = vst [vmem:[%s1162_s17 + $0x10] sm:$0xff] %v611_v19 }
 0x389   : > { %v631_v20 = vpop.f32.mrf.mxu1  ;;  %v613_v21 = vpop.f32.mrf.mxu0 }
 0x38a   : > { %685 = vst.msk [vmem:[%s1162_s17 + $0x48] sm:$0xff] %vm381_vm1, %v631_v20  ;;  %679 = vst.msk [vmem:[%s1162_s17 + $0x18] sm:$0xff] %vm381_vm1, %v613_v21 }
 0x38b   : > { %v635_v22 = vpop.f32.mrf.mxu1  ;;  %v617_v23 = vpop.f32.mrf.mxu0 }
 0x38c   : > { %686 = vst [vmem:[%s1162_s17 + $0x50] sm:$0xff] %v635_v22  ;;  %680 = vst [vmem:[%s1162_s17 + $0x20] sm:$0xff] %v617_v23 }
 0x38d   : > { %v637_v24 = vpop.f32.mrf.mxu1  ;;  %v619_v25 = vpop.f32.mrf.mxu0 }
 0x38e   : > { %687 = vst.msk [vmem:[%s1162_s17 + $0x58] sm:$0xff] %vm381_vm1, %v637_v24  ;;  %681 = vst.msk [vmem:[%s1162_s17 + $0x28] sm:$0xff] %vm381_vm1, %v619_v25 }
 0x38f   : > { %v641_v26 = vpop.f32.mrf.mxu1 }
 0x390   : > { %688 = vst [vmem:[%s1162_s17 + $0x60] sm:$0xff] %v641_v26 }
 0x391   : > { %v643_v27 = vpop.f32.mrf.mxu1 }
 0x392   : > { %689 = vst.msk [vmem:[%s1162_s17 + $0x68] sm:$0xff] %vm381_vm1, %v643_v27 }
 0x393   : > { %v647_v28 = vpop.f32.mrf.mxu1 }
 0x394   : > { %690 = vst [vmem:[%s1162_s17 + $0x70] sm:$0xff] %v647_v28 }
 0x395   : > { %v649_v29 = vpop.f32.mrf.mxu1 }
 0x396   : > { %691 = vst.msk [vmem:[%s1162_s17 + $0x78] sm:$0xff] %vm381_vm1, %v649_v29 }
 0x397   : > { %v653_v30 = vpop.f32.mrf.mxu1 }
 0x398   : > { %692 = vst [vmem:[%s1162_s17 + $0x80] sm:$0xff] %v653_v30 }
 0x399   : > { %v655_v31 = vpop.f32.mrf.mxu1 }
 0x39a   : > { %693 = vst.msk [vmem:[%s1162_s17 + $0x88] sm:$0xff] %vm381_vm1, %v655_v31 }
 0x39b   : > { %v659_v32 = vpop.f32.mrf.mxu1 }
 0x39c   : > { %694 = vst [vmem:[%s1162_s17 + $0x90] sm:$0xff] %v659_v32 }
 0x39d   : > { %v661_v33 = vpop.f32.mrf.mxu1 }
 0x39e   : > { %695 = vst.msk [vmem:[%s1162_s17 + $0x98] sm:$0xff] %vm381_vm1, %v661_v33 }
 0x39f   : > { %v665_v34 = vpop.f32.mrf.mxu1 }
 0x3a0   : > { %696 = vst [vmem:[%s1162_s17 + $0xa0] sm:$0xff] %v665_v34 }
 0x3a1   : > { %v667_v35 = vpop.f32.mrf.mxu1 }
 0x3a2   : > { %697 = vst.msk [vmem:[%s1162_s17 + $0xa8] sm:$0xff] %vm381_vm1, %v667_v35 }
 0x3a3   : > { %v671_v36 = vpop.f32.mrf.mxu1 }
 0x3a4   : > { %698 = vst [vmem:[%s1162_s17 + $0xb0] sm:$0xff] %v671_v36 }
 0x3a5   : > { %v673_v37 = vpop.f32.mrf.mxu1 }
 0x3a6   : > { %699 = vst.msk [vmem:[%s1162_s17 + $0xb8] sm:$0xff] %vm381_vm1, %v673_v37 }
 0x3a7   : > { %938 = shalt.err (!%p935_p3)
}
 0x3a8   : > { %s939_s4 = scalar_lea.hbm %s1202_s26, 3072  ;;  %s943_s7 = scalar_lea.hbm %s1254_s3, 6144 }
 0x3a9   : > { %p940_p4 = scmp.ne.s32.totalorder %s1202_s26, %s939_s4  ;;  %p944_p9 = scmp.lt.s32.totalorder %s1202_s26, %s1254_s3 }
 0x3aa   : > { %p945_p10 = scmp.lt.s32.totalorder %s943_s7, %s939_s4 }
 0x3ab   : > { %p941_p7 = pnand %p940_p4, %p1049_p5 }
 0x3ac   : > { %p946_p11 = por %p945_p10, %p944_p9 }
 0x3ad   : > { %p942_p8 = pneg %p941_p7 }
 0x3af   : > { %p947_p12 = pnand %p946_p11, %p942_p8 }
 0x3b1   : > { %950 = shalt.err (!%p947_p12)
}
 0x3b2   : > { %s989_s10 = smov 256   ;;  %s990_s11 = smov 16  }
 0x3b3   : > { %847 = dma.vmem_to_hbm [thread:$0]  (%p1049_p5), %s1204_s20, 3072, %s1202_s26, %s1211_s16, %s989_s10, %s989_s10, %s990_s11  }
 0x3b4 PF: > { %p853_p13 = scmp.ge.s32.totalorder %s985_s15, 2  ;;  %s729_s17 = sand.u32 1, %s973_s12  }
 0x3b5   : > { %s730_s19 = scalar_lea.sflag [#allocation3], %s729_s17 }
 0x3b6   : > { %p850_p0 = pnand %p853_p13, %p1053_p6 }
 0x3b8   : > { %p851_p1 = pneg %p850_p0 }
 0x3ba   : > { %968 = dma.done.wait (%p851_p1), %s730_s19, 3072  }
 0x3bb   : > { %970 = vsyncadd (%p851_p1), %s730_s19, 4294964224  ;;  %p13_p2 = scmp.ge.s32.totalorder %s1036_s18, 4   ;;  %s1257_s12 = smov %s977_s13 }
 0x3bc   : > { %s1258_s13 = smov %s981_s14  ;;  %s1259_s14 = smov %s1047_s21 }
 0x3bd   : > { %s1260_s15 = smov %s1036_s18  ;;  %15 = sbr.rel (!%p13_p2) target bundleno = 3 (0x3), region = 73 }
 0x3c2   :  { %735 = vsyncpa [#allocation3], 1 }
 0x3c3   :  { %737 = vsyncpa [#allocation3 + $0x1], 1 }

</bundles_post_ra>
